<compile_context>
chip_gen: v5e
topology: v5e:2x2
jax: 0.10.0
libtpu: 0.0.40
codegen_flags: <defaults>
</compile_context>

<pallas_src>
import numpy as np
import jax
import jax.numpy as jnp
from jax import lax
from jax.experimental import pallas as pl
from jax.experimental.pallas import tpu as pltpu


def _round_up(x: int, m: int) -> int:
    return ((x + m - 1) // m) * m


def _as_u32_rows(x):
    """Bit-exact view of a (R, C) f32/bf16 array as (R, C*itemsize//4) uint32."""
    r, c = x.shape
    if x.dtype == jnp.float32:
        return lax.bitcast_convert_type(x, jnp.uint32)
    if x.dtype == jnp.bfloat16:
        return lax.bitcast_convert_type(x.reshape(r, c // 2, 2), jnp.uint32)
    raise ValueError(f"unsupported embedding dtype {x.dtype}")


def _from_u32_rows(x_u32, dtype, c):
    """Inverse of _as_u32_rows: (R, W) uint32 -> (R, c) dtype."""
    r = x_u32.shape[0]
    if dtype == jnp.float32:
        return lax.bitcast_convert_type(x_u32, jnp.float32)
    if dtype == jnp.bfloat16:
        return lax.bitcast_convert_type(x_u32, jnp.bfloat16).reshape(r, c)
    raise ValueError(f"unsupported embedding dtype {dtype}")


# ---------------------------------------------------------------------------
# One-time ("model init") preparation — cached, NOT repeated per forward call.
# ---------------------------------------------------------------------------
def prepare_embedding_table(emb_table):
    """Lane-dense pad (u32 row width multiple of 128) + uint32 bit view."""
    v, h = emb_table.shape
    lane_mult = 256 if emb_table.dtype == jnp.bfloat16 else 128
    h_pad = _round_up(h, lane_mult)
    if h_pad != h:
        emb_table = jnp.pad(emb_table, ((0, 0), (0, h_pad - h)))
    return _as_u32_rows(emb_table), h, h_pad


def prepare_projection_weights(w, b, h_pad, dtype):
    """w: (H, D) torch-layout nn.Linear weight; b: (H,). Pads once to h_pad."""
    h, d = w.shape
    w_t = jnp.transpose(w)                                    # (D, H)
    if h_pad != h:
        w_t = jnp.pad(w_t, ((0, 0), (0, h_pad - h)))
        b = jnp.pad(b, (0, h_pad - h))
    return w_t.astype(dtype), b.reshape(1, h_pad).astype(jnp.float32)


# ---------------------------------------------------------------------------
# 1. dna_projection: nn.Linear(dna_hidden_size, text_hidden_size)
#    Tiled (M/tm, H/tn, D/tk) MXU matmul with an f32 VMEM accumulator.
# ---------------------------------------------------------------------------
def _dna_projection_kernel(x_ref, w_ref, b_ref, o_ref, acc_ref):
    @pl.when(pl.program_id(2) == 0)
    def _():
        acc_ref[...] = jnp.zeros_like(acc_ref)

    acc_ref[...] += jnp.dot(x_ref[...], w_ref[...],
                            preferred_element_type=jnp.float32)

    @pl.when(pl.program_id(2) == pl.num_programs(2) - 1)
    def _():
        o_ref[...] = (acc_ref[...] + b_ref[...]).astype(o_ref.dtype)


def dna_projection(x, w_t, b, out_dtype, *, tm=256, tn=256, tk=512):
    """(N, D) @ (D, H_pad) + (1, H_pad) -> (N_pad, H_pad); rows >= N are junk
    padding that the gather kernel never reads."""
    n, d = x.shape
    h = w_t.shape[1]                                   # multiple of 128
    tn = 256 if h % 256 == 0 else 128
    tm = min(tm, _round_up(n, 8))
    tk = min(tk, _round_up(d, 128))
    m_pad = _round_up(n, tm)
    d_pad = _round_up(d, tk)
    if m_pad != n or d_pad != d:
        x = jnp.pad(x, ((0, m_pad - n), (0, d_pad - d)))
    if d_pad != d:
        w_t = jnp.pad(w_t, ((0, d_pad - d), (0, 0)))
    grid = (m_pad // tm, h // tn, d_pad // tk)
    return pl.pallas_call(
        _dna_projection_kernel,
        out_shape=jax.ShapeDtypeStruct((m_pad, h), out_dtype),
        grid_spec=pltpu.PrefetchScalarGridSpec(
            num_scalar_prefetch=0,
            grid=grid,
            in_specs=[pl.BlockSpec((tm, tk), lambda i, j, k: (i, k)),
                      pl.BlockSpec((tk, tn), lambda i, j, k: (k, j)),
                      pl.BlockSpec((1, tn), lambda i, j, k: (0, j))],
            out_specs=pl.BlockSpec((tm, tn), lambda i, j, k: (i, j)),
            scratch_shapes=[pltpu.VMEM((tm, tn), jnp.float32)]),
        compiler_params=pltpu.CompilerParams(
            dimension_semantics=("parallel", "parallel", "arbitrary")),
    )(x, w_t, b)


# ---------------------------------------------------------------------------
# 2+3. Embedding row gather fused with the ordered <|dna_pad|> scatter.
#      Rows are DMA'd straight from HBM into the pipelined output tile.
# ---------------------------------------------------------------------------
def _make_merge_gather_kernel(total_tokens):
    def kernel(src_row_ref, dna_pos_ref, dna_lim_ref,   # SMEM scalar-prefetch
               emb_hbm, proj_hbm,                       # HBM (pl.ANY), u32 rows
               out_ref,                                 # (tile_t, W) u32 VMEM
               sem):                                    # DMA semaphore
        i = pl.program_id(0)
        tile_t = out_ref.shape[0]
        base = i * tile_t
        n_valid = jnp.minimum(tile_t, total_tokens - base)  # mask padded tail

        # Unconditional per-token gather: 1 SMEM read + 1 DMA descriptor,
        # no branches.  <|dna_pad|> rows also read the table here (valid row);
        # they are overwritten by the tiny loop below.
        @pl.loop(0, n_valid)
        def _issue(t):
            pltpu.make_async_copy(emb_hbm.at[src_row_ref[base + t]],
                                  out_ref.at[t], sem.at[0]).start()

        # Drain: every copy has identical byte count (W u32 words per row),
        # so the refs below are only a size template for the semaphore wait.
        @pl.loop(0, n_valid)
        def _drain(t):
            pltpu.make_async_copy(emb_hbm.at[0], out_ref.at[0], sem.at[0]).wait()

        # Ordered scatter of projected DNA rows: only the DNA tokens that fall
        # inside this tile (range comes from scalar-prefetched per-tile limits).
        # The k-th DNA token globally takes projected row k.
        d0 = dna_lim_ref[i]
        d1 = dna_lim_ref[i + 1]

        @pl.loop(d0, d1)
        def _dna_issue(k):
            pltpu.make_async_copy(proj_hbm.at[k],
                                  out_ref.at[dna_pos_ref[k] - base],
                                  sem.at[0]).start()

        @pl.loop(d0, d1)
        def _dna_drain(k):
            pltpu.make_async_copy(proj_hbm.at[0], out_ref.at[0], sem.at[0]).wait()

    return kernel


def dna_llm_forward_embeds(input_ids, emb_u32, emb_dtype, hidden_size,
                           hidden_pad, dna_hidden_flat, w_t_pad, b_pad,
                           dna_token_id, *, tile_t=512):
    """Builds the merged inputs_embeds exactly as DNALLMModel.forward does
    before handing them to self.text_model."""
    B, S = input_ids.shape
    T = B * S
    V, W = emb_u32.shape
    N = dna_hidden_flat.shape[0]

    # --- DNA projection, computed exactly once (hoisted out of token tiles) --
    if N > 0:
        proj = dna_projection(dna_hidden_flat.astype(emb_dtype),
                              w_t_pad, b_pad, out_dtype=emb_dtype)
        proj_u32 = _as_u32_rows(proj)
    else:
        proj_u32 = jnp.zeros((1, W), jnp.uint32)   # dummy row, never selected
    assert proj_u32.shape[1] == W, "embedding / projection row widths differ"

    # --- Per-token scalar metadata (goes to SMEM via scalar prefetch) --------
    ids_flat = input_ids.reshape(T).astype(jnp.int32)
    is_dna = (ids_flat == jnp.int32(dna_token_id)).astype(jnp.int32)

    # Mirror PyTorch's ValueError when concrete (skipped under tracing, where
    # the caller must guarantee #<|dna_pad|> tokens == N).
    try:
        n_dna = int(jnp.sum(is_dna))
    except Exception:
        n_dna = None
    if n_dna is not None and n_dna != N:
        raise ValueError(f"DNA features and DNA tokens do not match: "
                         f"features {N}, tokens: {n_dna}")

    src_row = jnp.clip(ids_flat, 0, V - 1)

    tile_t = max(8, _round_up(min(tile_t, _round_up(T, 8)), 8))
    T_pad = _round_up(T, tile_t)
    n_tiles = T_pad // tile_t
    src_row = jnp.pad(src_row, (0, T_pad - T))      # tail rows never issued

    # Flat positions of DNA tokens (in order) + per-tile [start, end) ranges.
    n_idx = max(N, 1)
    dna_pos = jnp.nonzero(is_dna, size=n_idx, fill_value=T_pad)[0].astype(jnp.int32)
    tile_bounds = jnp.arange(n_tiles + 1, dtype=jnp.int32) * jnp.int32(tile_t)
    dna_lim = jnp.searchsorted(dna_pos, tile_bounds, side="left").astype(jnp.int32)

    # VMEM = double-buffered output tile only (table + proj stay in HBM).
    vmem_needed = 2 * tile_t * W * 4 + (2 << 20)

    out_u32 = pl.pallas_call(
        _make_merge_gather_kernel(T),
        out_shape=jax.ShapeDtypeStruct((T_pad, W), jnp.uint32),
        grid_spec=pltpu.PrefetchScalarGridSpec(
            num_scalar_prefetch=3,
            grid=(n_tiles,),
            in_specs=[pl.BlockSpec(memory_space=pl.ANY),   # embedding table
                      pl.BlockSpec(memory_space=pl.ANY)],  # projected DNA rows
            out_specs=pl.BlockSpec((tile_t, W),
                                   lambda i, src, dpos, dlim: (i, 0)),
            scratch_shapes=[pltpu.SemaphoreType.DMA((1,))]),
        compiler_params=pltpu.CompilerParams(
            # TODO(synk): on v7x verify "parallel" shards token tiles across
            # both TensorCores; if not, switch to pltpu.CORE_PARALLEL.
            dimension_semantics=("parallel",),
            vmem_limit_bytes=int(max(vmem_needed, 8 << 20))),
        cost_estimate=pl.CostEstimate(
            flops=0, transcendentals=0,
            bytes_accessed=int((T + T_pad + n_idx) * W * 4)),
    )(src_row, dna_pos, dna_lim, emb_u32, proj_u32)

    merged = _from_u32_rows(out_u32[:T], emb_dtype, hidden_pad)[:, :hidden_size]
    return merged.reshape(B, S, hidden_size)


if __name__ == "__main__":
    # Small shapes consistent with the module's forward.
    B, S = 2, 8          # batch, text sequence length
    H = 128              # text_hidden_size
    D = 64               # dna_hidden_size
    V = 512              # text vocab size (synthetic)
    DNA_TOKEN_ID = 509   # '<|dna_pad|>'
    N_SEQ, L = 2, 4      # DNA sequences and their length (attn mask all ones)
    N = N_SEQ * L        # total DNA tokens == number of <|dna_pad|> tokens

    key = jax.random.PRNGKey(0)
    k_emb, k_dna, k_w, k_b = jax.random.split(key, 4)

    dtype = jnp.bfloat16  # bf16 table/weights: halves HBM traffic (memory-bound)
    emb_table = (jax.random.normal(k_emb, (V, H), jnp.float32) * 0.02).astype(dtype)
    # nn.Linear(dna_hidden, text_hidden): weight (H, D), bias (H,)
    w_torch = jax.random.normal(k_w, (H, D), jnp.float32) * 0.05
    b_torch = jax.random.normal(k_b, (H,), jnp.float32) * 0.01

    # ---- model-init-time preparation (cached, not repeated per forward) ----
    emb_u32, H_orig, H_pad = prepare_embedding_table(emb_table)
    w_t_pad, b_pad = prepare_projection_weights(w_torch, b_torch, H_pad, dtype)

    # TODO(synk): DNA encoder (NucleotideTransformer/Evo2) is an external
    # pretrained submodule; its last hidden states are synthesized here.
    dna_hidden = jax.random.normal(k_dna, (N_SEQ, L, D), jnp.float32).astype(dtype)
    # TODO(synk): ragged per-sequence valid-length slicing (attention_mask sums)
    # is host-side bookkeeping; full masks (all tokens valid) are assumed here.
    dna_hidden_flat = dna_hidden.reshape(N_SEQ * L, D)

    # input_ids with exactly N == 8 <|dna_pad|> tokens (4 per batch item).
    ids_np = np.array(
        [[5, DNA_TOKEN_ID, DNA_TOKEN_ID, DNA_TOKEN_ID, DNA_TOKEN_ID, 7, 9, 11],
         [3, 4, DNA_TOKEN_ID, DNA_TOKEN_ID, DNA_TOKEN_ID, DNA_TOKEN_ID, 2, 6]],
        dtype=np.int32)
    assert int((ids_np == DNA_TOKEN_ID).sum()) == N
    input_ids = jnp.asarray(ids_np)

    # tile_t=8 exercises multiple grid steps at this toy size (production: 512).
    out = dna_llm_forward_embeds(input_ids, emb_u32, dtype, H_orig, H_pad,
                                 dna_hidden_flat, w_t_pad, b_pad,
                                 DNA_TOKEN_ID, tile_t=8)
    out = jax.block_until_ready(out)

    # Pure numpy f32 reference (same semantics as the PyTorch forward).
    emb_f32 = np.array(emb_table.astype(jnp.float32))
    dna_f32 = np.array(dna_hidden_flat.astype(jnp.float32))
    wt_f32 = np.array(w_t_pad.astype(jnp.float32))[:, :H]   # (D, H)
    b_f32 = np.array(b_pad)[:, :H]                           # (1, H)
    proj_ref = dna_f32 @ wt_f32 + b_f32                      # (N, H)
    ids_flat_np = ids_np.reshape(-1)
    mask_np = ids_flat_np == DNA_TOKEN_ID
    didx_np = np.clip(np.cumsum(mask_np.astype(np.int32)) - 1, 0, N - 1)
    ref_flat = np.where(mask_np[:, None], proj_ref[didx_np], emb_f32[ids_flat_np])
    ref = ref_flat.reshape(B, S, H)

    np.testing.assert_allclose(np.array(out.astype(jnp.float32)), ref,
                               rtol=2e-2, atol=2e-2)

    # TODO(synk): the downstream quantized HF causal LM (self.text_model) is an
    # external pretrained model and is not translated here.
    print("KERNEL_OK")
</pallas_src>

<mosaic_0001>
module attributes {stable_mosaic.version = 11 : i64} {
  func.func @_dna_projection_kernel(%arg0: i32, %arg1: i32, %arg2: i32, %arg3: memref<8x128xbf16, #tpu.memory_space<vmem>>, %arg4: memref<128x256xbf16, #tpu.memory_space<vmem>>, %arg5: memref<1x256xf32, #tpu.memory_space<vmem>>, %arg6: memref<8x256xbf16, #tpu.memory_space<vmem>>, %arg7: memref<8x256xf32, #tpu.memory_space<vmem>>) attributes {dimension_semantics = [#tpu.dimension_semantics<parallel>, #tpu.dimension_semantics<parallel>, #tpu.dimension_semantics<arbitrary>], iteration_bounds = array<i64: 1, 1, 1>, scalar_prefetch = 0 : i64, scratch_operands = 1 : i64, tpu.core_type = #tpu.core_type<tc>, window_params = [{transform_indices = @transform_0, window_bounds = array<i64: 8, 128>}, {transform_indices = @transform_1, window_bounds = array<i64: 128, 256>}, {transform_indices = @transform_2, window_bounds = array<i64: 1, 256>}, {transform_indices = @transform_3, window_bounds = array<i64: 8, 256>}]} {
    %c0_i32 = arith.constant 0 : i32
    %0 = arith.cmpi eq, %arg2, %c0_i32 : i32
    %1 = arith.extui %0 : i1 to i32
    %c0_i32_0 = arith.constant 0 : i32
    %2 = arith.cmpi ne, %1, %c0_i32_0 : i32
    scf.if %2 {
      %cst_10 = arith.constant 0.000000e+00 : f32
      %12 = vector.broadcast %cst_10 : f32 to vector<8x256xf32>
      %c0_11 = arith.constant 0 : index
      %c0_12 = arith.constant 0 : index
      %13 = vector.load %arg7[%c0_11, %c0_12] : memref<8x256xf32, #tpu.memory_space<vmem>>, vector<8x256xf32>
      tpu.vector_store %arg7[%c0_11, %c0_12], %12 {strides = array<i32>} : memref<8x256xf32, #tpu.memory_space<vmem>>, vector<8x256xf32>,
    } else {
    }
    %c0 = arith.constant 0 : index
    %c0_1 = arith.constant 0 : index
    %3 = vector.load %arg7[%c0, %c0_1] : memref<8x256xf32, #tpu.memory_space<vmem>>, vector<8x256xf32>
    %c0_2 = arith.constant 0 : index
    %c0_3 = arith.constant 0 : index
    %4 = vector.load %arg3[%c0_2, %c0_3] : memref<8x128xbf16, #tpu.memory_space<vmem>>, vector<8x128xbf16>
    %c0_4 = arith.constant 0 : index
    %c0_5 = arith.constant 0 : index
    %5 = vector.load %arg4[%c0_4, %c0_5] : memref<128x256xbf16, #tpu.memory_space<vmem>>, vector<128x256xbf16>
    %cst = arith.constant dense<0.000000e+00> : vector<8x256xf32>
    %6 = tpu.matmul %4, %5, %cst {dimension_numbers = #tpu.dot_dimension_numbers<[1], [0], [0], [1], [0, 0, 1, 1], [], []>} : vector<8x128xbf16>, vector<128x256xbf16>, vector<8x256xf32> -> vector<8x256xf32>
    %7 = arith.addf %3, %6 : vector<8x256xf32>
    %c0_6 = arith.constant 0 : index
    %c0_7 = arith.constant 0 : index
    %8 = vector.load %arg7[%c0_6, %c0_7] : memref<8x256xf32, #tpu.memory_space<vmem>>, vector<8x256xf32>
    tpu.vector_store %arg7[%c0_6, %c0_7], %7 {strides = array<i32>} : memref<8x256xf32, #tpu.memory_space<vmem>>, vector<8x256xf32>,
    %c0_i32_8 = arith.constant 0 : i32
    %9 = arith.cmpi eq, %arg2, %c0_i32_8 : i32
    %10 = arith.extui %9 : i1 to i32
    %c0_i32_9 = arith.constant 0 : i32
    %11 = arith.cmpi ne, %10, %c0_i32_9 : i32
    scf.if %11 {
      %c0_10 = arith.constant 0 : index
      %c0_11 = arith.constant 0 : index
      %12 = vector.load %arg7[%c0_10, %c0_11] : memref<8x256xf32, #tpu.memory_space<vmem>>, vector<8x256xf32>
      %c0_12 = arith.constant 0 : index
      %c0_13 = arith.constant 0 : index
      %13 = vector.load %arg5[%c0_12, %c0_13] : memref<1x256xf32, #tpu.memory_space<vmem>>, vector<1x256xf32>
      %14 = vector.broadcast %13 : vector<1x256xf32> to vector<8x256xf32>
      %15 = arith.addf %12, %14 : vector<8x256xf32>
      %16 = arith.truncf %15 : vector<8x256xf32> to vector<8x256xbf16>
      %c0_14 = arith.constant 0 : index
      %c0_15 = arith.constant 0 : index
      %17 = vector.load %arg6[%c0_14, %c0_15] : memref<8x256xbf16, #tpu.memory_space<vmem>>, vector<8x256xbf16>
      tpu.vector_store %arg6[%c0_14, %c0_15], %16 {strides = array<i32>} : memref<8x256xbf16, #tpu.memory_space<vmem>>, vector<8x256xbf16>,
    } else {
    }
    return
  }
  func.func @transform_0(%arg0: i32, %arg1: i32, %arg2: i32) -> (i32, i32) {
    %c0_i32 = arith.constant 0 : i32
    return %arg0, %arg2 : i32, i32
  }
  func.func @transform_1(%arg0: i32, %arg1: i32, %arg2: i32) -> (i32, i32) {
    %c0_i32 = arith.constant 0 : i32
    return %arg2, %arg1 : i32, i32
  }
  func.func @transform_2(%arg0: i32, %arg1: i32, %arg2: i32) -> (i32, i32) {
    %c0_i32 = arith.constant 0 : i32
    %c0_i32_0 = arith.constant 0 : i32
    return %c0_i32, %arg1 : i32, i32
  }
  func.func @transform_3(%arg0: i32, %arg1: i32, %arg2: i32) -> (i32, i32) {
    %c0_i32 = arith.constant 0 : i32
    return %arg0, %arg1 : i32, i32
  }
}

</mosaic_0001>

<bundles_post_ra>
// kernel: tpu_custom_call.1
= control target key start
LH: loop header
LB: loop body
LE: loop exit
PB: predicated region body
PF: predicated region fallthrough
CT: control target
= control target key end

     0   :  { %8 = vsyncpa [#allocation4], 0  ;;  %s452_s0 = inlined_call_operand.hbm [shape: bf16[8,128], index: 0, kind: input, shape index: {}]   ;;  %s453_s1 = inlined_call_operand.hbm [shape: bf16[128,256], index: 1, kind: input, shape index: {}]   ;;  %s454_s2 = inlined_call_operand.hbm [shape: f32[1,256], index: 2, kind: input, shape index: {}]   ;;  %s455_s3 = inlined_call_operand.hbm [shape: bf16[8,256], index: 3, kind: output, shape index: {}]  }
   0x1   :  { %9 = vsyncpa [#allocation7], 0  ;;  %s26_s14 = sshll.u32 %s453_s1, 4  ;;  %s27_s14 = int_to_ptr.hbm [resolvable:$true] %s26_s14 }
   0x2   :  { %10 = vsyncpa [#allocation5], 0  ;;  %s414_s15 = smov [#allocation6]   ;;  %s16_s19 = sshll.u32 %s452_s0, 4  ;;  %s17_s19 = int_to_ptr.hbm [resolvable:$true] %s16_s19 }
   0x3   :  { %s28_s16 = sshll.u32 %s414_s15, 4  ;;  %s415_s20 = smov 128   ;;  %s29_s16 = int_to_ptr.vmem [resolvable:$true] %s28_s16 }
   0x4   :  { %s416_s21 = smov 8   ;;  %s417_s22 = smov [#allocation3]  }
   0x5   :  { %34 = dma.hbm_to_vmem [thread:$0]  %s27_s14, 2048, %s29_s16, [#allocation7], %s415_s20, %s415_s20, %s416_s21  }
   0x6   :  { %s18_s23 = sshll.u32 %s417_s22, 4  ;;  %s40_s26 = sshll.u32 %s454_s2, 4  ;;  %s19_s23 = int_to_ptr.vmem [resolvable:$true] %s18_s23  ;;  %s41_s26 = int_to_ptr.hbm [resolvable:$true] %s40_s26 }
   0x7   :  { %21 = dma.hbm_to_vmem [thread:$0]  %s17_s19, 64, %s19_s23, [#allocation4]  }
   0x8   :  { %s418_s1 = smov [#allocation8]  }
   0x9   :  { %s42_s27 = sshll.u32 %s418_s1, 4  ;;  %s43_s27 = int_to_ptr.vmem [resolvable:$true] %s42_s27 }
   0xa   :  { %45 = dma.hbm_to_vmem [thread:$0]  %s41_s26, 32, %s43_s27, [#allocation7]  }
   0xb   :  { %408 = dma.done.wait [#allocation4], 64  }
   0xc   :  { %409 = vsyncadd [#allocation4], 4294967232 }
   0xd   :  { %410 = dma.done.wait [#allocation7], 2080  }
   0xe   :  { %411 = vsyncadd [#allocation7], 4294965216  ;;  %v284_v0 = vld [vmem:[#allocation6 + $0x70] sm:$0xf]  ;;  %v305_v1 = vld [vmem:[#allocation6 + $0x74] sm:$0xf0] }
   0xf   :  { %v304_v2 = vld [vmem:[#allocation6 + $0x74] sm:$0xf]  ;;  %v285_v3 = vor.u32 %v305_v1, %v284_v0  ;;  %v286_v4 = vld [vmem:[#allocation6 + $0x78] sm:$0xf0]  ;;  %v276_v5 = vld [vmem:[#allocation6 + $0x60] sm:$0xf] }
  0x10   :  { %v303_v6 = vld [vmem:[#allocation6 + $0x64] sm:$0xf0]  ;;  %v289_v7 = vor.u32 %v304_v2, %v286_v4  ;;  %v302_v8 = vld [vmem:[#allocation6 + $0x64] sm:$0xf]  ;;  %v278_v9 = vld [vmem:[#allocation6 + $0x68] sm:$0xf0] }
  0x11   :  { %163 = vmatpush.bf16.msra.mxu0 %v285_v3  ;;  %v277_v10 = vor.u32 %v303_v6, %v276_v5  ;;  %v281_v11 = vor.u32 %v302_v8, %v278_v9  ;;  %v268_v12 = vld [vmem:[#allocation6 + $0x50] sm:$0xf]  ;;  %v301_v13 = vld [vmem:[#allocation6 + $0x54] sm:$0xf0]  ;;  %v300_v14 = vld [vmem:[#allocation6 + $0x54] sm:$0xf] }
  0x12   :  { %176 = vmatpush.bf16.msra.mxu1 %v289_v7  ;;  %v270_v15 = vld [vmem:[#allocation6 + $0x58] sm:$0xf0]  ;;  %v269_v16 = vor.u32 %v301_v13, %v268_v12  ;;  %v260_v18 = vld [vmem:[#allocation6 + $0x40] sm:$0xf]  ;;  %v299_v19 = vld [vmem:[#allocation6 + $0x44] sm:$0xf0] }
  0x13   :  { %v273_v17 = vor.u32 %v300_v14, %v270_v15  ;;  %v298_v20 = vld [vmem:[#allocation6 + $0x44] sm:$0xf]  ;;  %v262_v21 = vld [vmem:[#allocation6 + $0x48] sm:$0xf0]  ;;  %v261_v22 = vor.u32 %v299_v19, %v260_v18  ;;  %v252_v24 = vld [vmem:[#allocation6 + $0x30] sm:$0xf] }
  0x14   :  { %v265_v23 = vor.u32 %v298_v20, %v262_v21  ;;  %v297_v25 = vld [vmem:[#allocation6 + $0x34] sm:$0xf0]  ;;  %v296_v26 = vld [vmem:[#allocation6 + $0x34] sm:$0xf]  ;;  %v254_v27 = vld [vmem:[#allocation6 + $0x38] sm:$0xf0] }
  0x15   :  { %164 = vmatpush.bf16.msra.mxu0 %v277_v10  ;;  %v253_v28 = vor.u32 %v297_v25, %v252_v24  ;;  %v257_v29 = vor.u32 %v296_v26, %v254_v27  ;;  %v244_v30 = vld [vmem:[#allocation6 + $0x20] sm:$0xf]  ;;  %v295_v31 = vld [vmem:[#allocation6 + $0x24] sm:$0xf0]  ;;  %v294_v32 = vld [vmem:[#allocation6 + $0x24] sm:$0xf] }
  0x16   :  { %177 = vmatpush.bf16.msra.mxu1 %v281_v11  ;;  %v246_v33 = vld [vmem:[#allocation6 + $0x28] sm:$0xf0]  ;;  %v245_v34 = vor.u32 %v295_v31, %v244_v30  ;;  %v236_v36 = vld [vmem:[#allocation6 + $0x10] sm:$0xf]  ;;  %v293_v37 = vld [vmem:[#allocation6 + $0x14] sm:$0xf0] }
  0x17   :  { %v249_v35 = vor.u32 %v294_v32, %v246_v33  ;;  %v292_v38 = vld [vmem:[#allocation6 + $0x14] sm:$0xf]  ;;  %v238_v39 = vld [vmem:[#allocation6 + $0x18] sm:$0xf0]  ;;  %v237_v40 = vor.u32 %v293_v37, %v236_v36  ;;  %v228_v42 = vld [vmem:[#allocation6] sm:$0xf] }
  0x18   :  { %v241_v41 = vor.u32 %v292_v38, %v238_v39  ;;  %v291_v43 = vld [vmem:[#allocation6 + $0x4] sm:$0xf0]  ;;  %v290_v44 = vld [vmem:[#allocation6 + $0x4] sm:$0xf]  ;;  %v230_v45 = vld [vmem:[#allocation6 + $0x8] sm:$0xf0] }
  0x19   :  { %165 = vmatpush.bf16.msra.mxu0 %v269_v16  ;;  %v229_v46 = vor.u32 %v291_v43, %v228_v42  ;;  %v233_v47 = vor.u32 %v290_v44, %v230_v45  ;;  %v66_v48 = vld [vmem:[#allocation3] sm:$0xf]  ;;  %v198_v49 = vld [vmem:[#allocation8] sm:$0x3]  ;;  %s419_s0 = smov [#allocation9]   ;;  %s215_s30 = sshll.u32 %s455_s3, 4  ;;  %s216_s30 = int_to_ptr.hbm [resolvable:$true] %s215_s30 }
  0x1a   :  { %178 = vmatpush.bf16.msra.mxu1 %v273_v17  ;;  %v200_v50 = vperm.slane %v198_v49, 0  ;;  %v201_v51 = vperm.slane %v198_v49, 1  ;;  %s213_s2 = sshll.u32 %s419_s0, 4  ;;  %s214_s2 = int_to_ptr.vmem [resolvable:$true] %s213_s2 }
  0x1d   :  { %166 = vmatpush.bf16.msra.mxu0 %v261_v22 }
  0x1e   :  { %179 = vmatpush.bf16.msra.mxu1 %v265_v23 }
  0x21   :  { %167 = vmatpush.bf16.msra.mxu0 %v253_v28 }
  0x22   :  { %180 = vmatpush.bf16.msra.mxu1 %v257_v29 }
  0x25   :  { %168 = vmatpush.bf16.msra.mxu0 %v245_v34 }
  0x26   :  { %181 = vmatpush.bf16.msra.mxu1 %v249_v35 }
  0x29   :  { %169 = vmatpush.bf16.msra.mxu0 %v237_v40 }
  0x2a   :  { %182 = vmatpush.bf16.msra.mxu1 %v241_v41 }
  0x2d   :  { %170 = vmatpush.bf16.msra.mxu0 %v229_v46 }
  0x2e   :  { %183 = vmatpush.bf16.msra.mxu1 %v233_v47 }
  0x30   :  { %171 = vmatmul.bf16.vlgmr.msra.gmra.mxu0 %v66_v48 }
  0x31   :  { %184 = vmatmul.bf16.vlgmr.msra.gmra.mxu1 %v66_v48 }
  0xad   :  { %v172_v52 = vpop.f32.mrf.mxu0 }
  0xae   :  { %v204_v53 = vadd.f32 %v200_v50, %v172_v52  ;;  %v185_v54 = vpop.f32.mrf.mxu1 }
  0xaf   :  { %v205_v55 = vadd.f32 %v201_v51, %v185_v54 }
  0xb1   :  { %v206_v56 = vpack.c.bf16 %v205_v55, %v204_v53 }
  0xb3   :  { %207 = vst [vmem:[#allocation9] sm:$0xff] %v206_v56 }
  0xb4   :  { %218 = dma.vmem_to_hbm [thread:$0]  %s214_s2, 128, %s216_s30, [#allocation5]  }
  0xb5   :  { %v174_v57 = vpop.f32.mrf.mxu0 }
  0xb6   :  { %v187_v58 = vpop.f32.mrf.mxu1 }
  0xb7   :  { %412 = dma.done.wait [#allocation5], 128  }
  0xb8   :  { %413 = vsyncadd [#allocation5], 4294967168 }
  0xb9   :  { %223 = vsyncpa [#allocation4], 1 }
  0xba   :  { %224 = vsyncpa [#allocation7], 1 }
  0xbb   :  { %225 = vsyncpa [#allocation5], 1 }

</bundles_post_ra>
